<compile_context>
chip_gen: v7x
topology: tpu7x:2x2x1
jax: 0.10.0
libtpu: 0.0.40
codegen_flags: <defaults>
</compile_context>

<pallas_src>
import functools

import jax
import jax.numpy as jnp
from jax.experimental import pallas as pl
from jax.experimental.pallas import tpu as pltpu

# Single-block path if one copy of the tensor is at most this many bytes.
_SINGLE_BLOCK_MAX_BYTES = 4 << 20
# Per-block byte budget for the tiled fallback (~2 MiB: with Buffered(3) on
# in+out this is ~12 MiB of VMEM, safe on v5e/v6e/v7x defaults).
_TILE_MAX_BYTES = 2 << 20


def fc_head_kernel(bias_ref, x_ref, o_ref, *, scale_factor):
    """o = x * scale_factor + bias  (scalar affine on the response map)."""
    bias = bias_ref[0]  # scalar read from SMEM, once per block
    y = x_ref[...].astype(jnp.float32) * scale_factor + bias
    o_ref[...] = y.astype(o_ref.dtype)


def fc_head_forward(
    fused_feat,
    score_bias,
    scale_factor,
    *,
    single_block_max_bytes=_SINGLE_BLOCK_MAX_BYTES,
    tile_max_bytes=_TILE_MAX_BYTES,
):
    """Pallas implementation of FCHead.forward (head_convs is None branch).

    Args:
      fused_feat: [N, C, H, W] response map (C must be 1, as in the module).
      score_bias: [1] learnable scalar bias.
      scale_factor: python float (e.g. 0.001).
    Returns:
      cls_logits: [N, C, H, W]
    """
    N, C, H, W = fused_feat.shape
    assert C == 1, "FCHead without head_convs requires in_channels == 1"
    # TODO(synk): head_convs (build_stack_conv_layers) path not implemented —
    # its conv-stack configuration is external to this module; default branch used.

    dtype = fused_feat.dtype
    itemsize = jnp.dtype(dtype).itemsize
    rows, cols = N * C, H * W

    # Free row-major reshape (a bitcast in XLA) — no data movement.
    x2d = fused_feat.reshape(rows, cols)
    bias = score_bias.reshape(1).astype(jnp.float32)

    kernel = functools.partial(fc_head_kernel, scale_factor=float(scale_factor))
    total_bytes = rows * cols * itemsize
    cost = pl.CostEstimate(
        flops=2 * rows * cols,
        transcendentals=0,
        bytes_accessed=2 * total_bytes,
    )

    if total_bytes <= single_block_max_bytes:
        # Common case ([N,1,17,17]-sized inputs): one block, no grid at all.
        # Full-array BlockSpecs; Mosaic pads the tile inside VMEM, so no
        # wrapper-side padding / slicing is needed.
        out2d = pl.pallas_call(
            kernel,
            out_shape=jax.ShapeDtypeStruct((rows, cols), dtype),
            in_specs=[
                pl.BlockSpec(memory_space=pltpu.MemorySpace.SMEM),  # scalar bias
                pl.BlockSpec(memory_space=pltpu.MemorySpace.VMEM),  # whole slab
            ],
            out_specs=pl.BlockSpec(memory_space=pltpu.MemorySpace.VMEM),
            cost_estimate=cost,
        )(bias, x2d)
    else:
        # Large-input fallback: tile the row dimension on the UNPADDED slab.
        # Pallas handles the ragged last block (reads padded, writes masked),
        # so there is no pad/slice HBM traffic around the call.
        # Row alignment: f32 -> 8, bf16 -> 16, 8-bit -> 32 (sublane packing).
        row_align = 8 * max(1, 4 // itemsize)
        cols_vmem = pl.cdiv(cols, 128) * 128          # lane-padded VMEM footprint
        bytes_per_row = cols_vmem * itemsize
        block_rows = max(1, tile_max_bytes // bytes_per_row)
        block_rows = max(row_align, (block_rows // row_align) * row_align)
        block_rows = min(block_rows, pl.cdiv(rows, row_align) * row_align)
        grid = (pl.cdiv(rows, block_rows),)

        out2d = pl.pallas_call(
            kernel,
            out_shape=jax.ShapeDtypeStruct((rows, cols), dtype),
            grid=grid,
            in_specs=[
                pl.BlockSpec((1,), lambda i: (0,),
                             memory_space=pltpu.MemorySpace.SMEM),
                pl.BlockSpec((block_rows, cols), lambda i: (i, 0),
                             pipeline_mode=pl.Buffered(3)),
            ],
            out_specs=pl.BlockSpec((block_rows, cols), lambda i: (i, 0),
                                   pipeline_mode=pl.Buffered(3)),
            compiler_params=pltpu.CompilerParams(
                dimension_semantics=("parallel",),
            ),
            cost_estimate=cost,
        )(bias, x2d)

    return out2d.reshape(N, C, H, W)


if __name__ == "__main__":
    # Module hyper-parameters (head_convs=None => in_channels must be 1).
    stride = 8
    in_channels = 1
    scale_factor = 0.001

    # Deterministic parameter init: score_bias is zero-initialized in __init__,
    # but use a non-zero value here so the bias term is actually exercised.
    score_bias = jnp.full((1,), 0.25, dtype=jnp.float32)

    key = jax.random.PRNGKey(0)
    k1, k2 = jax.random.split(key)

    # ---- Common case: typical SiamFC response map, single-block path. ----
    fused_feat = jax.random.normal(k1, (2, in_channels, 17, 17), dtype=jnp.float32)
    cls_logits = fc_head_forward(fused_feat, score_bias, scale_factor)
    cls_logits = jax.block_until_ready(cls_logits)
    ref = fused_feat * scale_factor + score_bias[0]
    assert cls_logits.shape == fused_feat.shape
    assert jnp.allclose(cls_logits, ref, atol=1e-6, rtol=1e-6)

    # ---- Tiled fallback path (forced via tiny byte budgets) with a ragged
    # last block: rows=18, block_rows=8 -> grid=3, last block masked. ----
    fused_feat2 = jax.random.normal(k2, (18, in_channels, 17, 17), dtype=jnp.float32)
    cls_logits2 = fc_head_forward(
        fused_feat2, score_bias, scale_factor,
        single_block_max_bytes=0, tile_max_bytes=12 * 1024,
    )
    cls_logits2 = jax.block_until_ready(cls_logits2)
    ref2 = fused_feat2 * scale_factor + score_bias[0]
    assert cls_logits2.shape == fused_feat2.shape
    assert jnp.allclose(cls_logits2, ref2, atol=1e-6, rtol=1e-6)

    print("KERNEL_OK")
</pallas_src>

<mosaic_0001>
module attributes {stable_mosaic.version = 11 : i64} {
  func.func @fc_head_kernel(%arg0: memref<1xf32, #tpu.memory_space<smem>>, %arg1: memref<2x289xf32, #tpu.memory_space<vmem>>, %arg2: memref<2x289xf32, #tpu.memory_space<vmem>>) attributes {dimension_semantics = [], scalar_prefetch = 0 : i64, scratch_operands = 0 : i64, tpu.core_type = #tpu.core_type<tc>} {
    %c0 = arith.constant 0 : index
    %0 = memref.load %arg0[%c0] : memref<1xf32, #tpu.memory_space<smem>>
    %c0_0 = arith.constant 0 : index
    %c0_1 = arith.constant 0 : index
    %1 = vector.load %arg1[%c0_0, %c0_1] : memref<2x289xf32, #tpu.memory_space<vmem>>, vector<2x289xf32>
    %cst = arith.constant 1.000000e-03 : f32
    %2 = vector.broadcast %cst : f32 to vector<2x289xf32>
    %3 = arith.mulf %1, %2 : vector<2x289xf32>
    %4 = vector.broadcast %0 : f32 to vector<2x289xf32>
    %5 = arith.addf %3, %4 : vector<2x289xf32>
    %c0_2 = arith.constant 0 : index
    %c0_3 = arith.constant 0 : index
    %6 = vector.load %arg2[%c0_2, %c0_3] : memref<2x289xf32, #tpu.memory_space<vmem>>, vector<2x289xf32>
    tpu.vector_store %arg2[%c0_2, %c0_3], %5 {strides = array<i32>} : memref<2x289xf32, #tpu.memory_space<vmem>>, vector<2x289xf32>,
    return
  }
}

</mosaic_0001>

<bundles_post_ra>
// kernel: tpu_custom_call.1
= control target key start
LH: loop header
LB: loop body
LE: loop exit
PB: predicated region body
PF: predicated region fallthrough
CT: control target
= control target key end

     0   :  { %8 = vsyncpa [#allocation4], 0  ;;  %s145_s0 = inlined_call_operand.<no memory space> [shape: f32[1], index: 0, kind: input, shape index: {}]   ;;  %s146_s1 = inlined_call_operand.hbm [shape: f32[2,289], index: 1, kind: input, shape index: {}]   ;;  %s147_s2 = inlined_call_operand.hbm [shape: f32[2,289], index: 2, kind: output, shape index: {}]  }
   0x1   :  { %9 = vsyncpa [#allocation5], 0  ;;  %s101_s9 = smov [#allocation3]   ;;  %s53_s13 = scalar_lea.hbm %s146_s1, 96 }
   0x2   :  { %s18_s10 = sshll.u32 %s101_s9, 4  ;;  %p54_p0 = scmp.ne.s32.totalorder %s146_s1, %s53_s13  ;;  %s19_s10 = int_to_ptr.vmem [resolvable:$true] %s18_s10 }
   0x3   :  { %p57_p1 = scmp.lt.u32.totalorder %s53_s13, %s146_s1 }
   0x5   :  { %p59_p2 = pnand %p57_p1, %p54_p0 }
   0x7   :  { %62 = shalt.err (!%p59_p2)
}
   0x8   :  { %s63_s18 = scalar_lea.vmem %s19_s10, 96  ;;  %p68_p4 = scmp.lt.s32.totalorder %s19_s10, %s19_s10 }
   0x9   :  { %p64_p3 = scmp.ne.s32.totalorder %s19_s10, %s63_s18  ;;  %p69_p5 = scmp.lt.s32.totalorder %s63_s18, %s63_s18 }
   0xb   :  { %p70_p6 = por %p69_p5, %p68_p4 }
   0xd   :  { %p71_p7 = pnand %p70_p6, %p64_p3 }
   0xf   :  { %74 = shalt.err (!%p71_p7)
}
  0x10   :  { %21 = dma.hbm_to_vmem [thread:$0]  %s146_s1, 96, %s19_s10, [#allocation4]  }
  0x11   :  { %97 = dma.done.wait [#allocation4], 96  }
  0x12   :  { %98 = vsyncadd [#allocation4], 4294967200  ;;  %vm30_vm0 = vcmask 1041408   ;;  %vm31_vm1 = vcmask 1043458   ;;  %vm33_vm3 = vcmask 267268   ;;  %v28_v1 = vstv %s145_s0  ;;  %s102_s23 = smov [#allocation6]  }
  0x13   :  { %vm32_vm2 = vmor %vm31_vm1, %vm30_vm0  ;;  %v26_v0 = vld [vmem:[#allocation3] sm:$0x3f]  ;;  %s42_s24 = sshll.u32 %s102_s23, 4  ;;  %s43_s24 = int_to_ptr.vmem [resolvable:$true] %s42_s24 }
  0x14   :  { %v27_v2 = vmul.f32 0.001, %v26_v0  ;;  %vm34_vm4 = vmor %vm33_vm3, %vm32_vm2  ;;  %s75_s25 = scalar_lea.vmem %s43_s24, 96  ;;  %p80_p9 = scmp.lt.s32.totalorder %s43_s24, %s43_s24 }
  0x15   :  { %p76_p8 = scmp.ne.s32.totalorder %s43_s24, %s75_s25  ;;  %p81_p10 = scmp.lt.s32.totalorder %s75_s25, %s75_s25 }
  0x16   :  { %v29_v3 = vadd.f32 %v28_v1, %v27_v2 }
  0x17   :  { %p82_p11 = por %p81_p10, %p80_p9 }
  0x18   :  { %35 = vst.msk [vmem:[#allocation6] sm:$0x3f] %vm34_vm4, %v29_v3 }
  0x19   :  { %p83_p12 = pnand %p82_p11, %p76_p8 }
  0x1b   :  { %86 = shalt.err (!%p83_p12)
}
  0x1c   :  { %s87_s27 = scalar_lea.hbm %s147_s2, 96 }
  0x1d   :  { %p88_p13 = scmp.ne.s32.totalorder %s147_s2, %s87_s27  ;;  %p91_p0 = scmp.lt.u32.totalorder %s87_s27, %s147_s2 }
  0x1f   :  { %p93_p1 = pnand %p91_p0, %p88_p13 }
  0x21   :  { %96 = shalt.err (!%p93_p1)
}
  0x22   :  { %45 = dma.vmem_to_hbm [thread:$0]  %s43_s24, 96, %s147_s2, [#allocation5]  }
  0x23   :  { %99 = dma.done.wait [#allocation5], 96  }
  0x24   :  { %100 = vsyncadd [#allocation5], 4294967200 }
  0x25   :  { %49 = vsyncpa [#allocation4], 1 }
  0x26   :  { %50 = vsyncpa [#allocation5], 1 }

</bundles_post_ra>
